<compile_context>
chip_gen: v6e
topology: v6e:2x2x1
jax: 0.10.0
libtpu: 0.0.40
codegen_flags: <defaults>
</compile_context>

<pallas_src>
import math

import jax
import jax.numpy as jnp
import numpy as np
from jax.experimental import pallas as pl
from jax.experimental.pallas import tpu as pltpu

_LANE = 128


# ------------------------------------------------------------------
# Buffer construction (mirrors PositionalEncoding.__init__)
# ------------------------------------------------------------------
def make_positional_encoding_table(d_model, max_len=5000, dtype=jnp.float32):
    assert d_model % 2 == 0, "d_model must be even (matches the PyTorch buffer layout)"
    position = jnp.arange(max_len, dtype=jnp.float32)[:, None]              # (max_len, 1)
    div_term = jnp.exp(jnp.arange(0, d_model, 2, dtype=jnp.float32)
                       * (-math.log(10000.0) / d_model))                    # (d_model//2,)
    angles = position * div_term                                            # (max_len, d_model//2)
    pe = jnp.stack([jnp.sin(angles), jnp.cos(angles)], axis=-1)             # even=sin, odd=cos
    pe = pe.reshape(max_len, d_model)[:, None, :]                           # (max_len, 1, d_model)
    return pe.astype(dtype)


# ------------------------------------------------------------------
# Kernel: out = x + pe  (pe broadcast over the batch/sublane axis)
# ------------------------------------------------------------------
def _posenc_kernel(x_ref, pe_ref, o_ref):
    # x_ref : (ts, tb, D)   pe_ref : (ts, 1, D)   -> cheap sublane broadcast; D on lanes.
    o_ref[...] = (x_ref[...] + pe_ref[...]).astype(o_ref.dtype)


# ------------------------------------------------------------------
# Tile sizing: padded VMEM footprint, double buffering, megacore-aware
# ------------------------------------------------------------------
def _round_up(n, m):
    return ((n + m - 1) // m) * m


def _cdiv(a, b):
    return -(-a // b)


def _sublane(dtype):
    # sublane packing granule: 8 rows for 32-bit, 16 for bf16, 32 for 8-bit
    return max(8, 32 // jnp.dtype(dtype).itemsize)


def _choose_tiles(S, B, D, x_dtype, pe_dtype, out_dtype, budget_bytes):
    pad_d = _round_up(D, _LANE)

    def pipeline_row_bytes(tb):
        # padded VMEM bytes, per sequence row, for ALL pipeline buffers (x2 double-buffer)
        x_row = _round_up(tb, _sublane(x_dtype)) * pad_d * jnp.dtype(x_dtype).itemsize
        o_row = _round_up(tb, _sublane(out_dtype)) * pad_d * jnp.dtype(out_dtype).itemsize
        p_row = _sublane(pe_dtype) * pad_d * jnp.dtype(pe_dtype).itemsize
        return 2 * (x_row + o_row + p_row)

    # 1) batch tile: whole batch unless even one sequence row blows the budget
    tb = B
    if pipeline_row_bytes(B) > budget_bytes:
        tb = 8                                   # multiple of 8 -> sublane-legal block
        while tb + 8 <= B and pipeline_row_bytes(tb + 8) <= budget_bytes:
            tb += 8

    # 2) sequence tile: as many rows as the budget allows
    ts = max(1, min(S, budget_bytes // pipeline_row_bytes(tb)))

    # 3) never a single grid block along seq (v7x megacore needs >=2 to use both TCs)
    if S >= 2:
        ts = min(ts, _cdiv(S, 2))

    # 4) prefer >=8 pipeline steps while each x tile keeps >=2 MiB of real payload
    def x_tile_bytes(t):
        return t * min(tb, B) * D * jnp.dtype(x_dtype).itemsize

    while _cdiv(S, ts) < 8 and ts > 1 and x_tile_bytes(_cdiv(ts, 2)) >= (2 << 20):
        ts = _cdiv(ts, 2)

    vmem_needed = pipeline_row_bytes(tb) * ts
    return ts, tb, vmem_needed


# ------------------------------------------------------------------
# Forward pass wrapper
# ------------------------------------------------------------------
def positional_encoding(x, pe, *, vmem_budget_bytes=24 << 20, donate_x=False):
    """x: (S, B, D); pe: (max_len, 1, D) with max_len >= S. Returns x + pe[:S]."""
    S, B, D = x.shape
    max_len, one, d_pe = pe.shape
    assert one == 1 and d_pe == D and max_len >= S

    out_dtype = jnp.result_type(x.dtype, pe.dtype)   # matches PyTorch type promotion
    ts, tb, vmem_needed = _choose_tiles(S, B, D, x.dtype, pe.dtype, out_dtype,
                                        vmem_budget_bytes)
    grid = (_cdiv(S, ts), _cdiv(B, tb))

    extra = {}
    if donate_x and out_dtype == jnp.dtype(x.dtype):
        extra["input_output_aliases"] = {0: 0}       # only when caller no longer needs x

    return pl.pallas_call(
        _posenc_kernel,
        out_shape=jax.ShapeDtypeStruct((S, B, D), out_dtype),
        grid=grid,
        in_specs=[
            pl.BlockSpec((ts, tb, D), lambda i, j: (i, j, 0)),   # x tile
            pl.BlockSpec((ts, 1, D), lambda i, j: (i, 0, 0)),    # pe rows [i*ts, i*ts+ts)
        ],
        out_specs=pl.BlockSpec((ts, tb, D), lambda i, j: (i, j, 0)),
        compiler_params=pltpu.CompilerParams(
            dimension_semantics=("parallel", "parallel"),
            vmem_limit_bytes=int(min(vmem_needed + (4 << 20), 32 << 20)),
        ),
        **extra,
    )(x, pe)


class PositionalEncoding:
    """Mirror of the PyTorch module: builds the pe buffer once, adds it on call."""

    def __init__(self, d_model, max_len=5000, dtype=jnp.float32):
        self.pe = make_positional_encoding_table(d_model, max_len, dtype)

    def __call__(self, x, **kwargs):
        return positional_encoding(x, self.pe, **kwargs)


# ------------------------------------------------------------------
# Self-test
# ------------------------------------------------------------------
if __name__ == "__main__":
    key = jax.random.PRNGKey(0)
    MAX_LEN = 5000

    configs = [
        (8, 2, 32),     # toy shape implied by the module (seq=8, batch=2, d_model=32)
        (13, 2, 32),    # S not divisible by the seq tile -> masked ragged epilogue
        (16, 8, 128),   # sublane-full (B=8) and lane-dense (D=128) path
    ]
    for (S, B, D) in configs:
        key, sub = jax.random.split(key)
        x = jax.random.normal(sub, (S, B, D), jnp.float32)
        module = PositionalEncoding(D, max_len=MAX_LEN)
        out = jax.block_until_ready(module(x))
        assert out.shape == (S, B, D), out.shape
        ref = jax.block_until_ready(x + module.pe[:S])
        np.testing.assert_allclose(np.asarray(out), np.asarray(ref),
                                   atol=1e-6, rtol=1e-6)

    # Force the batch-split path (second grid axis) with an artificially tiny budget.
    key, sub = jax.random.split(key)
    x = jax.random.normal(sub, (4, 16, 128), jnp.float32)
    module = PositionalEncoding(128, max_len=MAX_LEN)
    out = jax.block_until_ready(positional_encoding(x, module.pe,
                                                    vmem_budget_bytes=32 * 1024))
    ref = jax.block_until_ready(x + module.pe[:4])
    np.testing.assert_allclose(np.asarray(out), np.asarray(ref), atol=1e-6, rtol=1e-6)

    print("KERNEL_OK")
</pallas_src>

<mosaic_0001>
module attributes {stable_mosaic.version = 11 : i64} {
  func.func @_posenc_kernel(%arg0: i32, %arg1: i32, %arg2: memref<4x2x32xf32, #tpu.memory_space<vmem>>, %arg3: memref<4x1x32xf32, #tpu.memory_space<vmem>>, %arg4: memref<4x2x32xf32, #tpu.memory_space<vmem>>) attributes {dimension_semantics = [#tpu.dimension_semantics<parallel>, #tpu.dimension_semantics<parallel>], iteration_bounds = array<i64: 2, 1>, scalar_prefetch = 0 : i64, scratch_operands = 0 : i64, tpu.core_type = #tpu.core_type<tc>, window_params = [{transform_indices = @transform_0, window_bounds = array<i64: 4, 2, 32>}, {transform_indices = @transform_1, window_bounds = array<i64: 4, 1, 32>}, {transform_indices = @transform_2, window_bounds = array<i64: 4, 2, 32>}]} {
    %c0 = arith.constant 0 : index
    %c0_0 = arith.constant 0 : index
    %c0_1 = arith.constant 0 : index
    %0 = vector.load %arg2[%c0, %c0_0, %c0_1] : memref<4x2x32xf32, #tpu.memory_space<vmem>>, vector<4x2x32xf32>
    %c0_2 = arith.constant 0 : index
    %c0_3 = arith.constant 0 : index
    %c0_4 = arith.constant 0 : index
    %1 = vector.load %arg3[%c0_2, %c0_3, %c0_4] : memref<4x1x32xf32, #tpu.memory_space<vmem>>, vector<4x1x32xf32>
    %2 = vector.broadcast %1 : vector<4x1x32xf32> to vector<4x2x32xf32>
    %3 = arith.addf %0, %2 : vector<4x2x32xf32>
    %c0_5 = arith.constant 0 : index
    %c0_6 = arith.constant 0 : index
    %c0_7 = arith.constant 0 : index
    %4 = vector.load %arg4[%c0_5, %c0_6, %c0_7] : memref<4x2x32xf32, #tpu.memory_space<vmem>>, vector<4x2x32xf32>
    tpu.vector_store %arg4[%c0_5, %c0_6, %c0_7], %3 {strides = array<i32>} : memref<4x2x32xf32, #tpu.memory_space<vmem>>, vector<4x2x32xf32>,
    return
  }
  func.func @transform_0(%arg0: i32, %arg1: i32) -> (i32, i32, i32) {
    %c0_i32 = arith.constant 0 : i32
    %c0_i32_0 = arith.constant 0 : i32
    return %arg0, %arg1, %c0_i32 : i32, i32, i32
  }
  func.func @transform_1(%arg0: i32, %arg1: i32) -> (i32, i32, i32) {
    %c0_i32 = arith.constant 0 : i32
    %c0_i32_0 = arith.constant 0 : i32
    %c0_i32_1 = arith.constant 0 : i32
    return %arg0, %c0_i32, %c0_i32_0 : i32, i32, i32
  }
  func.func @transform_2(%arg0: i32, %arg1: i32) -> (i32, i32, i32) {
    %c0_i32 = arith.constant 0 : i32
    %c0_i32_0 = arith.constant 0 : i32
    return %arg0, %arg1, %c0_i32 : i32, i32, i32
  }
}

</mosaic_0001>

<bundles_post_ra>
// kernel: tpu_custom_call.1
= control target key start
LH: loop header
LB: loop body
LE: loop exit
PB: predicated region body
PF: predicated region fallthrough
CT: control target
= control target key end

     0   :  { %7 = vsyncpa [#allocation3], 0  ;;  %s625_s0 = inlined_call_operand.vmem [shape: f32[8,2,32], index: 0, kind: input, shape index: {}]   ;;  %s626_s1 = inlined_call_operand.vmem [shape: f32[5000,1,32], index: 1, kind: input, shape index: {}]   ;;  %s627_s2 = inlined_call_operand.hbm [shape: f32[8,2,32], index: 2, kind: output, shape index: {}]  }
   0x1   :  { %9 = vsyncpa [#allocation3 + $0x1], 0  ;;  %s501_s9 = smov 0   ;;  %s503_s10 = smov 0  }
   0x2   :  { %s505_s11 = smov 0   ;;  %s507_s12 = smov 0  }
   0x3   :  { %s509_s13 = smov 0   ;;  %s511_s14 = smov 0  }
   0x4 LB: > { %s329_s15 = sadd.s32 4294967295, %s481_s14   ;;  %s330_s16 = sadd.s32 4294967294, %s481_s14   ;;  %s481_s14 = sphi %s511_s14, %s15_s14   ;;  %s477_s13 = sphi %s509_s13, %s634_s13   ;;  %s473_s12 = sphi %s507_s12, %s633_s12   ;;  %s469_s11 = sphi %s505_s11, %s632_s11   ;;  %s465_s10 = sphi %s503_s10, %s631_s10   ;;  %s461_s9 = sphi %s501_s9, %s630_s9  }
   0x5   : > { %s27_s17 = sadd.s32 1, %s477_s13  ;;  %s90_s18 = sadd.s32 1, %s469_s11 }
   0x6   : > { %p29_p0 = scmp.ge.s32.totalorder %s27_s17, 2  ;;  %p100_p1 = scmp.ne.s32.totalorder %s469_s11, %s465_s10 }
   0x7   : > { %p101_p2 = scmp.eq.s32.totalorder %s329_s15, 1  ;;  %p106_p3 = scmp.ne.s32.totalorder %s465_s10, %s461_s9 }
   0x8   : > { %s636_s17 = smov (%p29_p0, %s27_s17), 0  ;;  %p107_p5 = scmp.eq.s32.totalorder %s330_s16, 1 }
   0x9   : > { %p541_p4 = por %p101_p2, %p100_p1  ;;  %s85_s20 = ssub.s32 %s477_s13, %s636_s17 }
   0xa   : > { %p333_p6 = scmp.ge.s32.totalorder %s481_s14, 1  ;;  %p88_p7 = scmp.eq.s32.totalorder %s85_s20, 0 }
   0xb   : > { %p548_p8 = por %p107_p5, %p106_p3  ;;  %p145_p9 = scmp.lt.s32.totalorder %s481_s14, 3 }
   0xc   : > { %s554_s22 = scalar_select %p88_p7, %s469_s11, %s90_s18  }
   0xd   : > { %p146_p10 = pnand %p333_p6, %p145_p9 }
   0xe   : > { %s171_s23 = sand.u32 (!%p146_p10), 1, %s465_s10   ;;  %s335_s24 = sshll.u32 (!%p146_p10), %s473_s12, 2 }
   0xf   : > { %149 = sbr.rel (%p146_p10) target bundleno = 47 (0x2f), region = 28  ;;  %s334_s25 = sshll.u32 (!%p146_p10), %s171_s23, 3 }
  0x10   : > { %p175_p11 = scmp.lt.s32.totalorder (!%p146_p10), %s335_s24, 7  ;;  %p184_p12 = scmp.lt.s32.totalorder (!%p146_p10), %s335_s24, 4999 }
  0x11   : > { %s173_s6 = scalar_lea.vmem (!%p146_p10), [#allocation2], %s334_s25  ;;  %s347_s8 = sshll.u32 (!%p146_p10), %s473_s12, 7 }
  0x12   : > { %s245_s7 = sshll.u32 (!%p146_p10), %s173_s6, 4  ;;  %s572_s18 = scalar_lea.hbm (!%p146_p10), %s627_s2, %s347_s8  ;;  %s567_s7 = int_to_ptr.vmem [resolvable:$true] %s245_s7 }
  0x13   : > { %s580_s12 = scalar_lea.sflag (!%p146_p10), [#allocation3], %s171_s23  ;;  %s405_s20 = scalar_lea.vmem (!%p146_p10), %s567_s7, 128 }
  0x14   : > { %s176_s26 = scalar_select %p175_p11, %s335_s24, 7  ;;  %vm225_vm0 = vcmask 254976  }
  0x15   : > { %s638_s24 = smov (!%p184_p12, %s335_s24), 4999  ;;  %p406_p13 = scmp.ne.s32.totalorder %s567_s7, %s405_s20 }
  0x16   : > { %s336_s27 = sshll.u32 %s176_s26, 1  ;;  %s186_s5 = scalar_lea.vmem %s626_s1, %s638_s24 }
  0x17   : > { %s181_s30 = scalar_lea.vmem %s625_s0, %s336_s27  ;;  %v338_v1 = vld [vmem:[%s186_s5] ss:$0 sm:$0xff]  ;;  %v339_v4 = vld [vmem:[%s186_s5 + $0x1] ss:$0 sm:$0xff]  ;;  %v340_v7 = vld [vmem:[%s186_s5 + $0x2] ss:$0 sm:$0xff]  ;;  %p407_p0 = pnand %p406_p13, %p541_p4 }
  0x18   : > { %v189_v0 = vld [vmem:[%s181_s30] sm:$0x3]  ;;  %v190_v3 = vld [vmem:[%s181_s30 + $0x2] sm:$0x3]  ;;  %v191_v5 = vld [vmem:[%s181_s30 + $0x4] sm:$0x3] }
  0x19   : > { %v221_v2 = vadd.f32 %v338_v1, %v189_v0  ;;  %v222_v6 = vadd.f32 %v339_v4, %v190_v3  ;;  %v192_v8 = vld [vmem:[%s181_s30 + $0x6] sm:$0x3]  ;;  %v341_v9 = vld [vmem:[%s186_s5 + $0x3] ss:$0 sm:$0xff]  ;;  %v223_v10 = vadd.f32 %v340_v7, %v191_v5  ;;  %p408_p1 = pneg %p407_p0  ;;  %s483_s24 = smov [#allocation2]  }
  0x1a   : > { %v224_v11 = vadd.f32 %v341_v9, %v192_v8  ;;  %s409_s25 = sshll.u32 %s483_s24, 4  ;;  %s410_s25 = int_to_ptr.vmem [resolvable:$false] %s409_s25 }
  0x1b   : > { %226 = vst.msk [vmem:[%s173_s6] sm:$0x3] %vm225_vm0, %v221_v2  ;;  %227 = vst.msk [vmem:[%s173_s6 + $0x2] sm:$0x3] %vm225_vm0, %v222_v6  ;;  %s411_s26 = scalar_lea.vmem %s410_s25, 256  ;;  %p412_p2 = scmp.lt.s32.totalorder %s567_s7, %s410_s25 }
  0x1c   : > { %228 = vst.msk [vmem:[%s173_s6 + $0x4] sm:$0x3] %vm225_vm0, %v223_v10  ;;  %229 = vst.msk [vmem:[%s173_s6 + $0x6] sm:$0x3] %vm225_vm0, %v224_v11  ;;  %p413_p3 = scmp.lt.s32.totalorder %s411_s26, %s405_s20 }
  0x1e   : > { %p414_p5 = por %p413_p3, %p412_p2 }
  0x20   : > { %p415_p6 = pnand %p414_p5, %p408_p1 }
  0x22   : > { %418 = shalt.err (!%p415_p6)
}
  0x23   : > { %s419_s23 = scalar_lea.hbm %s572_s18, 128  ;;  %s423_s29 = scalar_lea.hbm %s627_s2, 256 }
  0x24   : > { %p420_p7 = scmp.ne.s32.totalorder %s572_s18, %s419_s23  ;;  %p424_p11 = scmp.lt.s32.totalorder %s572_s18, %s627_s2 }
  0x25   : > { %p425_p12 = scmp.lt.s32.totalorder %s423_s29, %s419_s23 }
  0x26   : > { %p421_p9 = pnand %p420_p7, %p541_p4 }
  0x27   : > { %p426_p13 = por %p425_p12, %p424_p11 }
  0x28   : > { %p422_p10 = pneg %p421_p9 }
  0x2a   : > { %p427_p0 = pnand %p426_p13, %p422_p10 }
  0x2c   : > { %430 = shalt.err (!%p427_p0)
}
  0x2d   : > { %s484_s4 = smov 32   ;;  %s485_s5 = smov 2  }
  0x2e   : > { %348 = dma.vmem_to_hbm [thread:$0]  (%p541_p4), %s567_s7, 128, %s572_s18, %s580_s12, %s484_s4, %s484_s4, %s485_s5  }
  0x2f PF: > { %p354_p1 = scmp.ge.s32.totalorder %s481_s14, 2  ;;  %s260_s6 = sand.u32 1, %s461_s9  }
  0x30   : > { %s261_s8 = scalar_lea.sflag [#allocation3], %s260_s6 }
  0x31   : > { %p351_p2 = pnand %p354_p1, %p548_p8 }
  0x33   : > { %p352_p3 = pneg %p351_p2 }
  0x35   : > { %456 = dma.done.wait (%p352_p3), %s261_s8, 128  }
  0x36   : > { %458 = vsyncadd (%p352_p3), %s261_s8, 4294967168  ;;  %s15_s14 = sadd.s32 1, %s481_s14   ;;  %s630_s9 = smov %s465_s10 }
  0x37   : > { %p12_p5 = scmp.ge.s32.totalorder %s15_s14, 4   ;;  %s631_s10 = smov %s469_s11 }
  0x38   : > { %s632_s11 = smov %s554_s22  ;;  %s633_s12 = smov %s477_s13 }
  0x39   : > { %s634_s13 = smov %s636_s17  ;;  %14 = sbr.rel (!%p12_p5) target bundleno = 4 (0x4), region = 66 }
  0x3e   :  { %266 = vsyncpa [#allocation3], 1 }
  0x3f   :  { %268 = vsyncpa [#allocation3 + $0x1], 1 }

</bundles_post_ra>
